<compile_context>
chip_gen: v7x
topology: tpu7x:2x2x1
jax: 0.10.0
libtpu: 0.0.40
codegen_flags: <defaults>
</compile_context>

<pallas_src>
import math

import jax
import jax.numpy as jnp
from jax.experimental import pallas as pl
from jax.experimental.pallas import tpu as pltpu


# ---------------------------------------------------------------------------
# helpers
# ---------------------------------------------------------------------------

def _round_up(n, m):
    return ((n + m - 1) // m) * m


# Conservative VMEM budget for the fused (whole-rhs-resident) path: fits the
# v7x 64 MiB physical VMEM with headroom; v5e/v6e have 128 MiB physical.
_FUSED_VMEM_BUDGET = 40 * 1024 * 1024


def _fused_row_tile(n_pad):
    """Largest adj row-strip (multiple of 128) that divides n_pad while still
    giving >= 2 grid steps (keeps pipelining / both v7x cores busy)."""
    for t in (512, 256, 128):
        if n_pad % t == 0 and n_pad // t >= 2:
            return t
    return min(n_pad, 128) if n_pad % 128 == 0 else n_pad


def _fused_vmem_bytes(n_pad, fi_pad, fo_pad, tm, small_fout,
                      cdt_bytes=2, out_bytes=4):
    x_b = 2 * n_pad * fi_pad * cdt_bytes        # resident X (double-buffered)
    w_b = 2 * fi_pad * fo_pad * cdt_bytes       # resident W
    adj_b = 2 * tm * n_pad * cdt_bytes          # streamed adj strip
    out_b = 2 * tm * fo_pad * out_bytes         # output strip
    s_b = (n_pad * fo_pad * cdt_bytes) if small_fout else 0     # S scratch
    tmp_b = (n_pad * fo_pad * 4) if small_fout else 0           # f32 X@W temp
    return x_b + w_b + adj_b + out_b + s_b + tmp_b


# ---------------------------------------------------------------------------
# fused single-pass kernel (small / medium N: whole rhs resident in VMEM)
# ---------------------------------------------------------------------------

def _make_fused_kernel(small_fout, has_bias, apply_relu):
    def kernel(*refs):
        if small_fout:
            if has_bias:
                x_ref, w_ref, b_ref, adj_ref, o_ref, s_ref = refs
            else:
                x_ref, w_ref, adj_ref, o_ref, s_ref = refs
                b_ref = None

            # S = X @ W computed once, kept VMEM-resident across row strips.
            @pl.when(pl.program_id(0) == 0)
            def _():
                s_ref[...] = jnp.dot(
                    x_ref[...], w_ref[...],
                    preferred_element_type=jnp.float32).astype(s_ref.dtype)

            out = jnp.dot(adj_ref[...], s_ref[...],
                          preferred_element_type=jnp.float32)
        else:
            if has_bias:
                x_ref, w_ref, b_ref, adj_ref, o_ref = refs
            else:
                x_ref, w_ref, adj_ref, o_ref = refs
                b_ref = None

            # Reassociated order: contract the N^2 matmul over the smaller
            # f_in, then apply W to the (tm, f_in) strip.
            h = jnp.dot(adj_ref[...], x_ref[...],
                        preferred_element_type=jnp.float32)
            out = jnp.dot(h.astype(x_ref.dtype), w_ref[...],
                          preferred_element_type=jnp.float32)

        if b_ref is not None:
            out = out + b_ref[...].astype(jnp.float32)
        if apply_relu:
            out = jnp.maximum(out, 0.0)
        o_ref[...] = out.astype(o_ref.dtype)

    return kernel


def _gcn_fused(x_p, adj_p, w_p, b_p, *, apply_relu, out_dtype, tm, small_fout):
    """Single pallas_call: ReLU(adj @ (X @ W) + b) on padded arrays."""
    n_pad, fi_pad = x_p.shape
    fo_pad = w_p.shape[1]
    cdt = x_p.dtype
    has_bias = b_p is not None
    assert n_pad % tm == 0
    grid = (n_pad // tm,)

    in_specs = [pl.BlockSpec((n_pad, fi_pad), lambda i: (0, 0)),   # X resident
                pl.BlockSpec((fi_pad, fo_pad), lambda i: (0, 0))]  # W resident
    args = [x_p, w_p]
    if has_bias:
        in_specs.append(pl.BlockSpec((1, fo_pad), lambda i: (0, 0)))
        args.append(b_p)
    in_specs.append(pl.BlockSpec((tm, n_pad), lambda i: (i, 0)))   # adj strip
    args.append(adj_p)

    scratch_shapes = []
    if small_fout:
        scratch_shapes.append(pltpu.VMEM((n_pad, fo_pad), cdt))

    kernel = _make_fused_kernel(small_fout, has_bias, apply_relu)

    cdt_isz = jnp.dtype(cdt).itemsize
    out_isz = jnp.dtype(out_dtype).itemsize
    flops = (2 * n_pad * fi_pad * fo_pad
             + 2 * n_pad * n_pad * (fo_pad if small_fout else fi_pad))
    bytes_accessed = int(adj_p.size * cdt_isz + x_p.size * cdt_isz
                         + w_p.size * cdt_isz + n_pad * fo_pad * out_isz)

    vmem_need = _fused_vmem_bytes(n_pad, fi_pad, fo_pad, tm, small_fout,
                                  cdt_isz, out_isz)
    vmem_limit = int(min(48 << 20, max(32 << 20, vmem_need + (8 << 20))))

    # Variant A (small_fout) initializes the S scratch at grid step 0, so the
    # row axis must run sequentially on one core; variant B is stateless.
    semantics = ("arbitrary",) if small_fout else ("parallel",)

    return pl.pallas_call(
        kernel,
        out_shape=jax.ShapeDtypeStruct((n_pad, fo_pad), out_dtype),
        grid_spec=pltpu.PrefetchScalarGridSpec(
            num_scalar_prefetch=0,
            grid=grid,
            in_specs=in_specs,
            out_specs=pl.BlockSpec((tm, fo_pad), lambda i: (i, 0)),
            scratch_shapes=scratch_shapes),
        compiler_params=pltpu.CompilerParams(
            dimension_semantics=semantics,
            vmem_limit_bytes=vmem_limit),
        cost_estimate=pl.CostEstimate(
            flops=int(flops), transcendentals=0, bytes_accessed=bytes_accessed),
    )(*args)


# ---------------------------------------------------------------------------
# large-N fallback: (row, k) grid over adj with big tiles
# ---------------------------------------------------------------------------

def _feat_kernel(x_ref, w_ref, o_ref):
    o_ref[...] = jnp.dot(x_ref[...], w_ref[...],
                         preferred_element_type=jnp.float32).astype(o_ref.dtype)


def _feat_matmul(x, w, *, out_dtype, row_tile):
    """Row-tiled X @ W (no bias / relu); used only on the large-N fallback."""
    n_p, f_i = x.shape
    f_o = w.shape[1]
    tm = min(row_tile, n_p)
    assert n_p % tm == 0
    grid = (n_p // tm,)
    return pl.pallas_call(
        _feat_kernel,
        out_shape=jax.ShapeDtypeStruct((n_p, f_o), out_dtype),
        grid_spec=pltpu.PrefetchScalarGridSpec(
            num_scalar_prefetch=0,
            grid=grid,
            in_specs=[pl.BlockSpec((tm, f_i), lambda i: (i, 0)),
                      pl.BlockSpec((f_i, f_o), lambda i: (0, 0))],
            out_specs=pl.BlockSpec((tm, f_o), lambda i: (i, 0))),
        compiler_params=pltpu.CompilerParams(
            dimension_semantics=("parallel",)),
        cost_estimate=pl.CostEstimate(
            flops=2 * n_p * f_i * f_o,
            transcendentals=0,
            bytes_accessed=int(x.size * x.dtype.itemsize
                               + w.size * w.dtype.itemsize
                               + n_p * f_o * jnp.dtype(out_dtype).itemsize)),
    )(x, w)


def _make_kgrid_kernel(small_fout, has_bias, apply_relu):
    def kernel(*refs):
        if small_fout:
            if has_bias:
                adj_ref, rhs_ref, b_ref, o_ref, acc_ref = refs
            else:
                adj_ref, rhs_ref, o_ref, acc_ref = refs
                b_ref = None
            w_ref = None
        else:
            if has_bias:
                adj_ref, rhs_ref, w_ref, b_ref, o_ref, acc_ref = refs
            else:
                adj_ref, rhs_ref, w_ref, o_ref, acc_ref = refs
                b_ref = None

        k = pl.program_id(1)

        @pl.when(k == 0)
        def _():
            acc_ref[...] = jnp.zeros_like(acc_ref)

        acc_ref[...] += jnp.dot(adj_ref[...], rhs_ref[...],
                                preferred_element_type=jnp.float32)

        @pl.when(k == pl.num_programs(1) - 1)
        def _():
            out = acc_ref[...]
            if w_ref is not None:   # fold the weight matmul into the epilogue
                out = jnp.dot(out.astype(w_ref.dtype), w_ref[...],
                              preferred_element_type=jnp.float32)
            if b_ref is not None:
                out = out + b_ref[...].astype(jnp.float32)
            if apply_relu:
                out = jnp.maximum(out, 0.0)
            o_ref[...] = out.astype(o_ref.dtype)

    return kernel


def _gcn_kgrid(x_p, adj_p, w_p, b_p, *, apply_relu, out_dtype, small_fout):
    """(row, k) grid adj matmul with f32 accumulator for large N."""
    n_pad, fi_pad = x_p.shape
    fo_pad = w_p.shape[1]
    cdt = x_p.dtype
    has_bias = b_p is not None

    # Big adj tiles: amortize per-grid-step overhead, full-size HBM bursts.
    tm, tk = 512, 1024
    assert n_pad % tm == 0 and n_pad % tk == 0

    if small_fout:
        # S = X @ W once (O(N*F) traffic, dwarfed by the O(N^2) adj stream).
        rhs = _feat_matmul(x_p, w_p, out_dtype=cdt, row_tile=tm)
        f_acc = fo_pad
    else:
        rhs = x_p            # contract the N^2 matmul over the smaller f_in
        f_acc = fi_pad

    grid = (n_pad // tm, n_pad // tk)
    kernel = _make_kgrid_kernel(small_fout, has_bias, apply_relu)

    # Deeper pipelining on the dominant (HBM-bound) adj stream.
    in_specs = [pl.BlockSpec((tm, tk), lambda i, k: (i, k),
                             pipeline_mode=pl.Buffered(3)),
                pl.BlockSpec((tk, f_acc), lambda i, k: (k, 0))]
    args = [adj_p, rhs]
    if not small_fout:
        in_specs.append(pl.BlockSpec((fi_pad, fo_pad), lambda i, k: (0, 0)))
        args.append(w_p)
    if has_bias:
        in_specs.append(pl.BlockSpec((1, fo_pad), lambda i, k: (0, 0)))
        args.append(b_p)

    cdt_isz = jnp.dtype(cdt).itemsize
    out_isz = jnp.dtype(out_dtype).itemsize
    n_row_tiles = n_pad // tm
    bytes_accessed = int(adj_p.size * cdt_isz
                         + rhs.size * cdt_isz * n_row_tiles   # rhs re-read per row tile
                         + (w_p.size * cdt_isz if not small_fout else 0)
                         + n_pad * fo_pad * out_isz)
    flops = int(2 * n_pad * n_pad * f_acc
                + (0 if small_fout else 2 * n_pad * fi_pad * fo_pad))

    vmem_need = (3 * tm * tk * cdt_isz            # adj, Buffered(3)
                 + 2 * tk * f_acc * cdt_isz       # rhs
                 + 2 * tm * fo_pad * out_isz      # out
                 + tm * f_acc * 4                 # f32 accumulator
                 + (2 * fi_pad * fo_pad * cdt_isz if not small_fout else 0))
    vmem_limit = int(min(64 << 20, max(32 << 20, vmem_need + (8 << 20))))

    return pl.pallas_call(
        kernel,
        out_shape=jax.ShapeDtypeStruct((n_pad, fo_pad), out_dtype),
        grid_spec=pltpu.PrefetchScalarGridSpec(
            num_scalar_prefetch=0,
            grid=grid,
            in_specs=in_specs,
            out_specs=pl.BlockSpec((tm, fo_pad), lambda i, k: (i, 0)),
            scratch_shapes=[pltpu.VMEM((tm, f_acc), jnp.float32)]),
        compiler_params=pltpu.CompilerParams(
            dimension_semantics=("parallel", "arbitrary"),
            vmem_limit_bytes=vmem_limit),
        cost_estimate=pl.CostEstimate(
            flops=flops, transcendentals=0, bytes_accessed=bytes_accessed),
    )(*args)


# ---------------------------------------------------------------------------
# public GCN forward
# ---------------------------------------------------------------------------

def gcn_forward(x, adj, weight, bias=None, *, apply_relu=True,
                compute_dtype=jnp.bfloat16, force_kgrid=False):
    """Pallas GCN forward: ReLU(adj @ (x @ weight) + bias).

    x:[N,F_in], adj:[N,N] (dense), weight:[F_in,F_out], bias:[F_out] or None.
    Inputs are cast to `compute_dtype` (bf16) for the MXU with f32
    accumulation; the result is returned as f32 with shape [N, F_out].
    """
    n, f_in = x.shape
    f_out = weight.shape[1]
    fi_pad = _round_up(f_in, 128)
    fo_pad = _round_up(f_out, 128)
    small_fout = f_out <= f_in
    cdt = compute_dtype
    cdt_isz = jnp.dtype(cdt).itemsize

    n_pad = _round_up(n, 128)
    tm = _fused_row_tile(n_pad)
    fused_bytes = _fused_vmem_bytes(n_pad, fi_pad, fo_pad, tm, small_fout,
                                    cdt_isz, 4)
    use_fused = (not force_kgrid) and fused_bytes <= _FUSED_VMEM_BUDGET
    if not use_fused:
        n_pad = _round_up(n, 1024)   # k-grid path tiles: tm=512, tk=1024

    x_p = jnp.pad(x.astype(cdt), ((0, n_pad - n), (0, fi_pad - f_in)))
    adj_p = jnp.pad(adj.astype(cdt), ((0, n_pad - n), (0, n_pad - n)))
    w_p = jnp.pad(weight.astype(cdt), ((0, fi_pad - f_in), (0, fo_pad - f_out)))
    b_p = None
    if bias is not None:
        b_p = jnp.pad(bias.astype(jnp.float32).reshape(1, -1),
                      ((0, 0), (0, fo_pad - f_out)))

    if use_fused:
        out_p = _gcn_fused(x_p, adj_p, w_p, b_p, apply_relu=apply_relu,
                           out_dtype=jnp.float32, tm=tm, small_fout=small_fout)
    else:
        out_p = _gcn_kgrid(x_p, adj_p, w_p, b_p, apply_relu=apply_relu,
                           out_dtype=jnp.float32, small_fout=small_fout)

    return out_p[:n, :f_out]


def gcn_two_layer(x, adj, w1, w2, *, compute_dtype=jnp.bfloat16):
    """gc1 -> dropout (identity at inference) -> gc2, as in 'code_update' /
    'ancestor_update'. Keeps padded bf16 shapes between the layers (no slice,
    re-pad, or f32 intermediate writeback). gc1/gc2 are bias-free, so padded
    rows remain exactly zero between layers."""
    n, f = x.shape
    assert w1.shape == (f, f) and w2.shape == (f, f)
    f_pad = _round_up(f, 128)
    cdt = compute_dtype
    cdt_isz = jnp.dtype(cdt).itemsize

    n_pad = _round_up(n, 128)
    tm = _fused_row_tile(n_pad)
    use_fused = _fused_vmem_bytes(n_pad, f_pad, f_pad, tm, True,
                                  cdt_isz, 4) <= _FUSED_VMEM_BUDGET
    if not use_fused:
        n_pad = _round_up(n, 1024)

    x_p = jnp.pad(x.astype(cdt), ((0, n_pad - n), (0, f_pad - f)))
    adj_p = jnp.pad(adj.astype(cdt), ((0, n_pad - n), (0, n_pad - n)))
    w1_p = jnp.pad(w1.astype(cdt), ((0, f_pad - f), (0, f_pad - f)))
    w2_p = jnp.pad(w2.astype(cdt), ((0, f_pad - f), (0, f_pad - f)))

    if use_fused:
        h1 = _gcn_fused(x_p, adj_p, w1_p, None, apply_relu=True,
                        out_dtype=cdt, tm=tm, small_fout=True)
        # TODO(synk): training-mode F.dropout would go here (pltpu PRNG).
        out_p = _gcn_fused(h1, adj_p, w2_p, None, apply_relu=True,
                           out_dtype=jnp.float32, tm=tm, small_fout=True)
    else:
        h1 = _gcn_kgrid(x_p, adj_p, w1_p, None, apply_relu=True,
                        out_dtype=cdt, small_fout=True)
        out_p = _gcn_kgrid(h1, adj_p, w2_p, None, apply_relu=True,
                           out_dtype=jnp.float32, small_fout=True)
    return out_p[:n, :f]


def init_gcn_params(key, in_features, out_features, bias=False):
    """Mirror the PyTorch module init: U(-stdv, stdv), stdv = 1/sqrt(out)."""
    stdv = 1.0 / math.sqrt(out_features)
    k_w, k_b = jax.random.split(key)
    weight = jax.random.uniform(k_w, (in_features, out_features),
                                dtype=jnp.float32, minval=-stdv, maxval=stdv)
    b = None
    if bias:
        b = jax.random.uniform(k_b, (out_features,), dtype=jnp.float32,
                               minval=-stdv, maxval=stdv)
    return weight, b


# ---------------------------------------------------------------------------
# demo / correctness check
# ---------------------------------------------------------------------------

if __name__ == "__main__":
    key = jax.random.PRNGKey(0)
    k_x, k_adj, k_w1, k_w2, k_wb, k_b = jax.random.split(key, 6)

    N = 200             # number of medical codes (graph nodes)
    dynamic_size = 64   # args.dynamic_size: gc1/gc2 are dynamic -> dynamic

    x = jax.random.normal(k_x, (N, dynamic_size), dtype=jnp.float32)

    # Symmetric, row-normalized dense adjacency (spmm treated as dense matmul).
    a = jax.random.uniform(k_adj, (N, N), dtype=jnp.float32)
    a = (a > 0.9).astype(jnp.float32)
    a = jnp.minimum(a + a.T + jnp.eye(N, dtype=jnp.float32), 1.0)
    adj = a / jnp.sum(a, axis=1, keepdims=True)

    w1, _ = init_gcn_params(k_w1, dynamic_size, dynamic_size, bias=False)
    w2, _ = init_gcn_params(k_w2, dynamic_size, dynamic_size, bias=False)

    # --- fused gc1 -> gc2 stack (graph part of the 'code_update' branch) ---
    out = jax.jit(gcn_two_layer)(x, adj, w1, w2)
    jax.block_until_ready(out)
    ref1 = jnp.maximum(adj @ (x @ w1), 0.0)
    ref = jnp.maximum(adj @ (ref1 @ w2), 0.0)
    assert out.shape == (N, dynamic_size)
    err = float(jnp.max(jnp.abs(out - ref)))
    assert err < 5e-2, f"two-layer max abs err {err}"

    # --- bias + ReLU epilogue (fused path) ---
    bias = jax.random.uniform(k_b, (dynamic_size,), dtype=jnp.float32,
                              minval=-0.125, maxval=0.125)
    out_b = gcn_forward(x, adj, w1, bias)
    jax.block_until_ready(out_b)
    ref_b = jnp.maximum(adj @ (x @ w1) + bias, 0.0)
    err_b = float(jnp.max(jnp.abs(out_b - ref_b)))
    assert err_b < 5e-2, f"bias-path max abs err {err_b}"

    # --- reassociated (F_in < F_out) fused path ---
    x16 = x[:, :16]
    wb, _ = init_gcn_params(k_wb, 16, dynamic_size, bias=False)
    out_w = gcn_forward(x16, adj, wb)
    jax.block_until_ready(out_w)
    ref_w = jnp.maximum(adj @ (x16 @ wb), 0.0)
    err_w = float(jnp.max(jnp.abs(out_w - ref_w)))
    assert err_w < 5e-2, f"reassociated-path max abs err {err_w}"

    # --- large-N fallback ((row, k)-grid) path, forced, both orders ---
    out_k = gcn_forward(x, adj, w1, bias, force_kgrid=True)
    jax.block_until_ready(out_k)
    err_k = float(jnp.max(jnp.abs(out_k - ref_b)))
    assert err_k < 5e-2, f"kgrid-path max abs err {err_k}"

    out_kw = gcn_forward(x16, adj, wb, force_kgrid=True)
    jax.block_until_ready(out_kw)
    err_kw = float(jnp.max(jnp.abs(out_kw - ref_w)))
    assert err_kw < 5e-2, f"kgrid reassociated max abs err {err_kw}"

    print("KERNEL_OK")
</pallas_src>

<mosaic_0001>
module attributes {stable_mosaic.version = 11 : i64} {
  func.func @kernel(%arg0: i32, %arg1: memref<256x128xbf16, #tpu.memory_space<vmem>>, %arg2: memref<128x128xbf16, #tpu.memory_space<vmem>>, %arg3: memref<128x256xbf16, #tpu.memory_space<vmem>>, %arg4: memref<128x128xf32, #tpu.memory_space<vmem>>, %arg5: memref<256x128xbf16, #tpu.memory_space<vmem>>) attributes {dimension_semantics = [#tpu.dimension_semantics<arbitrary>], iteration_bounds = array<i64: 2>, scalar_prefetch = 0 : i64, scratch_operands = 1 : i64, tpu.core_type = #tpu.core_type<tc>, window_params = [{pipeline_mode = #tpu.pipeline_mode<synchronous>, transform_indices = @transform_0, window_bounds = array<i64: 256, 128>}, {pipeline_mode = #tpu.pipeline_mode<synchronous>, transform_indices = @transform_1, window_bounds = array<i64: 128, 128>}, {transform_indices = @transform_2, window_bounds = array<i64: 128, 256>}, {transform_indices = @transform_3, window_bounds = array<i64: 128, 128>}]} {
    %c0_i32 = arith.constant 0 : i32
    %0 = arith.cmpi eq, %arg0, %c0_i32 : i32
    %1 = arith.extui %0 : i1 to i32
    %c0_i32_0 = arith.constant 0 : i32
    %2 = arith.cmpi ne, %1, %c0_i32_0 : i32
    scf.if %2 {
      %c0_7 = arith.constant 0 : index
      %c0_8 = arith.constant 0 : index
      %9 = vector.load %arg1[%c0_7, %c0_8] : memref<256x128xbf16, #tpu.memory_space<vmem>>, vector<256x128xbf16>
      %c0_9 = arith.constant 0 : index
      %c0_10 = arith.constant 0 : index
      %10 = vector.load %arg2[%c0_9, %c0_10] : memref<128x128xbf16, #tpu.memory_space<vmem>>, vector<128x128xbf16>
      %cst_11 = arith.constant dense<0.000000e+00> : vector<256x128xf32>
      %11 = tpu.matmul %9, %10, %cst_11 {dimension_numbers = #tpu.dot_dimension_numbers<[1], [0], [0], [1], [0, 0, 1, 1], [], []>} : vector<256x128xbf16>, vector<128x128xbf16>, vector<256x128xf32> -> vector<256x128xf32>
      %12 = arith.truncf %11 : vector<256x128xf32> to vector<256x128xbf16>
      %c0_12 = arith.constant 0 : index
      %c0_13 = arith.constant 0 : index
      %13 = vector.load %arg5[%c0_12, %c0_13] : memref<256x128xbf16, #tpu.memory_space<vmem>>, vector<256x128xbf16>
      tpu.vector_store %arg5[%c0_12, %c0_13], %12 {strides = array<i32>} : memref<256x128xbf16, #tpu.memory_space<vmem>>, vector<256x128xbf16>,
    } else {
    }
    %c0 = arith.constant 0 : index
    %c0_1 = arith.constant 0 : index
    %3 = vector.load %arg3[%c0, %c0_1] : memref<128x256xbf16, #tpu.memory_space<vmem>>, vector<128x256xbf16>
    %c0_2 = arith.constant 0 : index
    %c0_3 = arith.constant 0 : index
    %4 = vector.load %arg5[%c0_2, %c0_3] : memref<256x128xbf16, #tpu.memory_space<vmem>>, vector<256x128xbf16>
    %cst = arith.constant dense<0.000000e+00> : vector<128x128xf32>
    %5 = tpu.matmul %3, %4, %cst {dimension_numbers = #tpu.dot_dimension_numbers<[1], [0], [0], [1], [0, 0, 1, 1], [], []>} : vector<128x256xbf16>, vector<256x128xbf16>, vector<128x128xf32> -> vector<128x128xf32>
    %cst_4 = arith.constant 0.000000e+00 : f32
    %6 = vector.broadcast %cst_4 : f32 to vector<128x128xf32>
    %7 = arith.maximumf %5, %6 : vector<128x128xf32>
    %c0_5 = arith.constant 0 : index
    %c0_6 = arith.constant 0 : index
    %8 = vector.load %arg4[%c0_5, %c0_6] : memref<128x128xf32, #tpu.memory_space<vmem>>, vector<128x128xf32>
    tpu.vector_store %arg4[%c0_5, %c0_6], %7 {strides = array<i32>} : memref<128x128xf32, #tpu.memory_space<vmem>>, vector<128x128xf32>,
    return
  }
  func.func @transform_0(%arg0: i32) -> (i32, i32) {
    %c0_i32 = arith.constant 0 : i32
    %c0_i32_0 = arith.constant 0 : i32
    %c0_i32_1 = arith.constant 0 : i32
    return %c0_i32, %c0_i32_0 : i32, i32
  }
  func.func @transform_1(%arg0: i32) -> (i32, i32) {
    %c0_i32 = arith.constant 0 : i32
    %c0_i32_0 = arith.constant 0 : i32
    %c0_i32_1 = arith.constant 0 : i32
    return %c0_i32, %c0_i32_0 : i32, i32
  }
  func.func @transform_2(%arg0: i32) -> (i32, i32) {
    %c0_i32 = arith.constant 0 : i32
    %c0_i32_0 = arith.constant 0 : i32
    return %arg0, %c0_i32 : i32, i32
  }
  func.func @transform_3(%arg0: i32) -> (i32, i32) {
    %c0_i32 = arith.constant 0 : i32
    %c0_i32_0 = arith.constant 0 : i32
    return %arg0, %c0_i32 : i32, i32
  }
}

module attributes {stable_mosaic.version = 11 : i64} {
  func.func @kernel(%arg0: i32, %arg1: memref<256x128xbf16, #tpu.memory_space<vmem>>, %arg2: memref<128x128xbf16, #tpu.memory_space<vmem>>, %arg3: memref<128x256xbf16, #tpu.memory_space<vmem>>, %arg4: memref<128x128xbf16, #tpu.memory_space<vmem>>, %arg5: memref<256x128xbf16, #tpu.memory_space<vmem>>) attributes {dimension_semantics = [#tpu.dimension_semantics<arbitrary>], iteration_bounds = array<i64: 2>, scalar_prefetch = 0 : i64, scratch_operands = 1 : i64, tpu.core_type = #tpu.core_type<tc>, window_params = [{pipeline_mode = #tpu.pipeline_mode<synchronous>, transform_indices = @transform_0, window_bounds = array<i64: 256, 128>}, {pipeline_mode = #tpu.pipeline_mode<synchronous>, transform_indices = @transform_1, window_bounds = array<i64: 128, 128>}, {transform_indices = @transform_2, window_bounds = array<i64: 128, 256>}, {transform_indices = @transform_3, window_bounds = array<i64: 128, 128>}]} {
    %c0_i32 = arith.constant 0 : i32
    %0 = arith.cmpi eq, %arg0, %c0_i32 : i32
    %1 = arith.extui %0 : i1 to i32
    %c0_i32_0 = arith.constant 0 : i32
    %2 = arith.cmpi ne, %1, %c0_i32_0 : i32
    scf.if %2 {
      %c0_7 = arith.constant 0 : index
      %c0_8 = arith.constant 0 : index
      %10 = vector.load %arg1[%c0_7, %c0_8] : memref<256x128xbf16, #tpu.memory_space<vmem>>, vector<256x128xbf16>
      %c0_9 = arith.constant 0 : index
      %c0_10 = arith.constant 0 : index
      %11 = vector.load %arg2[%c0_9, %c0_10] : memref<128x128xbf16, #tpu.memory_space<vmem>>, vector<128x128xbf16>
      %cst_11 = arith.constant dense<0.000000e+00> : vector<256x128xf32>
      %12 = tpu.matmul %10, %11, %cst_11 {dimension_numbers = #tpu.dot_dimension_numbers<[1], [0], [0], [1], [0, 0, 1, 1], [], []>} : vector<256x128xbf16>, vector<128x128xbf16>, vector<256x128xf32> -> vector<256x128xf32>
      %13 = arith.truncf %12 : vector<256x128xf32> to vector<256x128xbf16>
      %c0_12 = arith.constant 0 : index
      %c0_13 = arith.constant 0 : index
      %14 = vector.load %arg5[%c0_12, %c0_13] : memref<256x128xbf16, #tpu.memory_space<vmem>>, vector<256x128xbf16>
      tpu.vector_store %arg5[%c0_12, %c0_13], %13 {strides = array<i32>} : memref<256x128xbf16, #tpu.memory_space<vmem>>, vector<256x128xbf16>,
    } else {
    }
    %c0 = arith.constant 0 : index
    %c0_1 = arith.constant 0 : index
    %3 = vector.load %arg3[%c0, %c0_1] : memref<128x256xbf16, #tpu.memory_space<vmem>>, vector<128x256xbf16>
    %c0_2 = arith.constant 0 : index
    %c0_3 = arith.constant 0 : index
    %4 = vector.load %arg5[%c0_2, %c0_3] : memref<256x128xbf16, #tpu.memory_space<vmem>>, vector<256x128xbf16>
    %cst = arith.constant dense<0.000000e+00> : vector<128x128xf32>
    %5 = tpu.matmul %3, %4, %cst {dimension_numbers = #tpu.dot_dimension_numbers<[1], [0], [0], [1], [0, 0, 1, 1], [], []>} : vector<128x256xbf16>, vector<256x128xbf16>, vector<128x128xf32> -> vector<128x128xf32>
    %cst_4 = arith.constant 0.000000e+00 : f32
    %6 = vector.broadcast %cst_4 : f32 to vector<128x128xf32>
    %7 = arith.maximumf %5, %6 : vector<128x128xf32>
    %8 = arith.truncf %7 : vector<128x128xf32> to vector<128x128xbf16>
    %c0_5 = arith.constant 0 : index
    %c0_6 = arith.constant 0 : index
    %9 = vector.load %arg4[%c0_5, %c0_6] : memref<128x128xbf16, #tpu.memory_space<vmem>>, vector<128x128xbf16>
    tpu.vector_store %arg4[%c0_5, %c0_6], %8 {strides = array<i32>} : memref<128x128xbf16, #tpu.memory_space<vmem>>, vector<128x128xbf16>,
    return
  }
  func.func @transform_0(%arg0: i32) -> (i32, i32) {
    %c0_i32 = arith.constant 0 : i32
    %c0_i32_0 = arith.constant 0 : i32
    %c0_i32_1 = arith.constant 0 : i32
    return %c0_i32, %c0_i32_0 : i32, i32
  }
  func.func @transform_1(%arg0: i32) -> (i32, i32) {
    %c0_i32 = arith.constant 0 : i32
    %c0_i32_0 = arith.constant 0 : i32
    %c0_i32_1 = arith.constant 0 : i32
    return %c0_i32, %c0_i32_0 : i32, i32
  }
  func.func @transform_2(%arg0: i32) -> (i32, i32) {
    %c0_i32 = arith.constant 0 : i32
    %c0_i32_0 = arith.constant 0 : i32
    return %arg0, %c0_i32 : i32, i32
  }
  func.func @transform_3(%arg0: i32) -> (i32, i32) {
    %c0_i32 = arith.constant 0 : i32
    %c0_i32_0 = arith.constant 0 : i32
    return %arg0, %c0_i32 : i32, i32
  }
}

</mosaic_0001>

<bundles_post_ra>
// kernel: gcn_two_layer.3
= control target key start
LH: loop header
LB: loop body
LE: loop exit
PB: predicated region body
PF: predicated region fallthrough
CT: control target
= control target key end

     0   :  { %s1170_s12 = smov 0   ;;  %s1295_s0 = inlined_call_operand.vmem [shape: bf16[256,128], index: 0, kind: input, shape index: {}]   ;;  %s1296_s1 = inlined_call_operand.vmem [shape: bf16[128,128], index: 1, kind: input, shape index: {}]   ;;  %s1297_s2 = inlined_call_operand.vmem [shape: bf16[256,256], index: 2, kind: input, shape index: {}]   ;;  %s1298_s3 = inlined_call_operand.vmem [shape: f32[256,128], index: 3, kind: output, shape index: {}]  }
   0x1 LB: > { %s864_s13 = sadd.s32 4294967295, %s1148_s12   ;;  %p868_p0 = scmp.ge.s32.totalorder %s1148_s12, 1  ;;  %s1148_s12 = sphi %s1170_s12, %s13_s12  }
   0x2   : > { %p139_p1 = scmp.lt.s32.totalorder %s1148_s12, 3 }
   0x4   : > { %p140_p2 = pnand %p868_p0, %p139_p1 }
   0x5   : > { %s869_s14 = sshll.u32 (!%p140_p2), %s864_s13, 4  ;;  %p874_p4 = scmp.ne.s32.totalorder (!%p140_p2), %s864_s13, 0 }
   0x6   : > { %143 = sbr.rel (%p140_p2) target bundleno = 566 (0x236), region = 32  ;;  %p165_p3 = scmp.lt.s32.totalorder (!%p140_p2), %s869_s14, 31 }
   0xd   : > { %s1300_s14 = smov (!%p165_p3, %s869_s14), 31  ;;  %181 = sbr.rel (%p874_p4) target bundleno = 289 (0x121), region = 36 }
   0xe   : > { %s917_s15 = sshll.u32 %s1300_s14, 3  ;;  %v1094_v0 = vld [vmem:[%s1296_s1] sm:$0xff] (!%p874_p4)   ;;  %v1095_v1 = vld [vmem:[%s1296_s1 + $0x8] sm:$0xff] (!%p874_p4)   ;;  %v1096_v2 = vld [vmem:[%s1296_s1 + $0x10] sm:$0xff] (!%p874_p4)  }
   0xf   : > { %s1181_s18 = scalar_lea.vmem %s1297_s2, %s917_s15  ;;  %s1186_s21 = scalar_lea.vmem %s1298_s3, %s917_s15  ;;  %1006 = vmatprep.subr.bf16.mxu0 (!%p874_p4), %v1094_v0  ;;  %1054 = vmatprep.subr.bf16.mxu1 (!%p874_p4), %v1094_v0  ;;  %v1097_v3 = vld [vmem:[%s1296_s1 + $0x18] sm:$0xff] (!%p874_p4)   ;;  %v1102_v4 = vld [vmem:[%s1295_s0] sm:$0xff] (!%p874_p4)   ;;  %v1099_v7 = vld [vmem:[%s1296_s1 + $0x28] sm:$0xff] (!%p874_p4)  }
  0x10   : > { %1007 = vmatpush3.bf16.msra.mxu0 (!%p874_p4), %v1094_v0  ;;  %1062 = vmatpush3.bf16.msra.mxu1 (!%p874_p4), %v1094_v0  ;;  %v1103_v5 = vld [vmem:[%s1295_s0 + $0x40] sm:$0xff] (!%p874_p4)   ;;  %v1100_v8 = vld [vmem:[%s1296_s1 + $0x30] sm:$0xff] (!%p874_p4)   ;;  %v1101_v9 = vld [vmem:[%s1296_s1 + $0x38] sm:$0xff] (!%p874_p4)  }
  0x11   : > { %1008 = vmatprep.subr.bf16.mxu0 (!%p874_p4), %v1095_v1  ;;  %1055 = vmatprep.subr.bf16.mxu1 (!%p874_p4), %v1095_v1  ;;  %v1098_v6 = vld [vmem:[%s1296_s1 + $0x20] sm:$0xff] (!%p874_p4)   ;;  %v1104_v10 = vld [vmem:[%s1295_s0 + $0x8] sm:$0xff] (!%p874_p4)   ;;  %v1106_v12 = vld [vmem:[%s1295_s0 + $0x10] sm:$0xff] (!%p874_p4)  }
  0x12   : > { %1022 = vmatprep.mubr.bf16.mxu0 (!%p874_p4), %v1102_v4  ;;  %1038 = vmatprep.mubr.bf16.mxu1 (!%p874_p4), %v1103_v5  ;;  %v1105_v11 = vld [vmem:[%s1295_s0 + $0x48] sm:$0xff] (!%p874_p4)   ;;  %v1107_v13 = vld [vmem:[%s1295_s0 + $0x50] sm:$0xff] (!%p874_p4)   ;;  %v1108_v14 = vld [vmem:[%s1295_s0 + $0x18] sm:$0xff] (!%p874_p4)  }
  0x13   : > { %v1109_v15 = vld [vmem:[%s1295_s0 + $0x58] sm:$0xff] (!%p874_p4)   ;;  %v1110_v16 = vld [vmem:[%s1295_s0 + $0x20] sm:$0xff] (!%p874_p4)   ;;  %v1112_v18 = vld [vmem:[%s1295_s0 + $0x28] sm:$0xff] (!%p874_p4)  }
  0x14   : > { %1009 = vmatpush3.bf16.msra.mxu0 %v1095_v1  ;;  %1063 = vmatpush3.bf16.msra.mxu1 %v1095_v1  ;;  %v1111_v17 = vld [vmem:[%s1295_s0 + $0x60] sm:$0xff]   ;;  %v1113_v19 = vld [vmem:[%s1295_s0 + $0x68] sm:$0xff]   ;;  %v1114_v20 = vld [vmem:[%s1295_s0 + $0x30] sm:$0xff]  }
  0x15   : > { %1010 = vmatprep.subr.bf16.mxu0 %v1096_v2  ;;  %1056 = vmatprep.subr.bf16.mxu1 %v1096_v2  ;;  %v1115_v21 = vld [vmem:[%s1295_s0 + $0x70] sm:$0xff]   ;;  %v1116_v22 = vld [vmem:[%s1295_s0 + $0x38] sm:$0xff]  }
  0x16   : > { %v1117_v23 = vld [vmem:[%s1295_s0 + $0x78] sm:$0xff]  }
  0x18   : > { %1011 = vmatpush3.bf16.msra.mxu0 %v1096_v2  ;;  %1064 = vmatpush3.bf16.msra.mxu1 %v1096_v2 }
  0x19   : > { %1012 = vmatprep.subr.bf16.mxu0 %v1097_v3  ;;  %1057 = vmatprep.subr.bf16.mxu1 %v1097_v3 }
  0x1c   : > { %1013 = vmatpush3.bf16.msra.mxu0 %v1097_v3  ;;  %1065 = vmatpush3.bf16.msra.mxu1 %v1097_v3 }
  0x1d   : > { %1014 = vmatprep.subr.bf16.mxu0 %v1098_v6  ;;  %1058 = vmatprep.subr.bf16.mxu1 %v1098_v6 }
  0x20   : > { %1015 = vmatpush3.bf16.msra.mxu0 %v1098_v6  ;;  %1066 = vmatpush3.bf16.msra.mxu1 %v1098_v6 }
  0x21   : > { %1016 = vmatprep.subr.bf16.mxu0 %v1099_v7  ;;  %1059 = vmatprep.subr.bf16.mxu1 %v1099_v7 }
  0x24   : > { %1017 = vmatpush3.bf16.msra.mxu0 %v1099_v7  ;;  %1067 = vmatpush3.bf16.msra.mxu1 %v1099_v7 }
  0x25   : > { %1018 = vmatprep.subr.bf16.mxu0 %v1100_v8  ;;  %1060 = vmatprep.subr.bf16.mxu1 %v1100_v8 }
  0x28   : > { %1019 = vmatpush3.bf16.msra.mxu0 %v1100_v8  ;;  %1068 = vmatpush3.bf16.msra.mxu1 %v1100_v8 }
  0x29   : > { %1020 = vmatprep.subr.bf16.mxu0 %v1101_v9  ;;  %1061 = vmatprep.subr.bf16.mxu1 %v1101_v9 }
  0x2c   : > { %1021 = vmatpush3.bf16.msra.mxu0 %v1101_v9  ;;  %1069 = vmatpush3.bf16.msra.mxu1 %v1101_v9 }
  0x2f   : > { %1023 = vmatmul.mubr.bf16.vlgmr.msra.gmra.mrb[0].mxu0 %v1104_v10  ;;  %1039 = vmatmul.mubr.bf16.vlgmr.msra.gmra.mrb[0].mxu1 %v1105_v11 }
  0x30   : > { %1026 = vmatprep.mubr.bf16.mxu0 %v1106_v12  ;;  %1042 = vmatprep.mubr.bf16.mxu1 %v1107_v13 }
  0x37   : > { %1027 = vmatmul.mubr.bf16.gmra.mrb[4].mxu0 %v1108_v14  ;;  %1043 = vmatmul.mubr.bf16.gmra.mrb[4].mxu1 %v1109_v15 }
  0x38   : > { %1030 = vmatprep.mubr.bf16.mxu0 %v1110_v16  ;;  %1046 = vmatprep.mubr.bf16.mxu1 %v1111_v17 }
  0x3f   : > { %1031 = vmatmul.mubr.bf16.gmra.mrb[8].mxu0 %v1112_v18  ;;  %1047 = vmatmul.mubr.bf16.gmra.mrb[8].mxu1 %v1113_v19 }
  0x40   : > { %1034 = vmatprep.mubr.bf16.mxu0 %v1114_v20  ;;  %1050 = vmatprep.mubr.bf16.mxu1 %v1115_v21 }
  0x47   : > { %1035 = vmatmul.mubr.bf16.gmra.mrb[12].mxu0 %v1116_v22  ;;  %1051 = vmatmul.mubr.bf16.gmra.mrb[12].mxu1 %v1117_v23 }
 0x102   : > { %v1024_v24 = vpop.f32.mrb[0].mxu0  ;;  %v1040_v25 = vpop.f32.mrb[0].mxu1 }
 0x103   : > { %v408_v26 = vpop.f32.mrb[1].mxu0  ;;  %v472_v27 = vpop.f32.mrb[1].mxu1 }
 0x104   : > { %v1025_v28 = vpop.f32.mrb[2].mxu0  ;;  %v1041_v29 = vpop.f32.mrb[2].mxu1 }
 0x105   : > { %v536_v30 = vpack.c.bf16 %v1025_v28, %v1024_v24  ;;  %v544_v31 = vpack.c.bf16 %v1041_v29, %v1040_v25  ;;  %v411_v32 = vpop.f32.mrb[3].mxu0  ;;  %v475_v33 = vpop.f32.mrb[3].mxu1 }
 0x106   : > { %v535_v34 = vpack.c.bf16 %v411_v32, %v408_v26  ;;  %v543_v35 = vpack.c.bf16 %v475_v33, %v472_v27 }
 0x107   : > { %552 = vst [vmem:[#allocation2 + $0x8] sm:$0xff] %v536_v30  ;;  %560 = vst [vmem:[#allocation2 + $0x48] sm:$0xff] %v544_v31 }
 0x108   : > { %551 = vst [vmem:[#allocation2] sm:$0xff] %v535_v34  ;;  %559 = vst [vmem:[#allocation2 + $0x40] sm:$0xff] %v543_v35 }
 0x10a   : > { %v1028_v36 = vpop.f32.mrb[4].mxu0  ;;  %v1044_v37 = vpop.f32.mrb[4].mxu1 }
 0x10b   : > { %v424_v38 = vpop.f32.mrb[5].mxu0  ;;  %v488_v39 = vpop.f32.mrb[5].mxu1 }
 0x10c   : > { %v1029_v40 = vpop.f32.mrb[6].mxu0  ;;  %v1045_v41 = vpop.f32.mrb[6].mxu1 }
 0x10d   : > { %v538_v42 = vpack.c.bf16 %v1029_v40, %v1028_v36  ;;  %v546_v43 = vpack.c.bf16 %v1045_v41, %v1044_v37  ;;  %v427_v44 = vpop.f32.mrb[7].mxu0  ;;  %v491_v45 = vpop.f32.mrb[7].mxu1 }
 0x10e   : > { %v537_v46 = vpack.c.bf16 %v427_v44, %v424_v38  ;;  %v545_v47 = vpack.c.bf16 %v491_v45, %v488_v39 }
 0x10f   : > { %554 = vst [vmem:[#allocation2 + $0x18] sm:$0xff] %v538_v42  ;;  %562 = vst [vmem:[#allocation2 + $0x58] sm:$0xff] %v546_v43 }
 0x110   : > { %553 = vst [vmem:[#allocation2 + $0x10] sm:$0xff] %v537_v46  ;;  %561 = vst [vmem:[#allocation2 + $0x50] sm:$0xff] %v545_v47 }
 0x112   : > { %v1032_v48 = vpop.f32.mrb[8].mxu0  ;;  %v1048_v49 = vpop.f32.mrb[8].mxu1 }
 0x113   : > { %v440_v50 = vpop.f32.mrb[9].mxu0  ;;  %v504_v51 = vpop.f32.mrb[9].mxu1 }
 0x114   : > { %v1033_v52 = vpop.f32.mrb[10].mxu0  ;;  %v1049_v53 = vpop.f32.mrb[10].mxu1 }
 0x115   : > { %v540_v54 = vpack.c.bf16 %v1033_v52, %v1032_v48  ;;  %v548_v55 = vpack.c.bf16 %v1049_v53, %v1048_v49  ;;  %v443_v56 = vpop.f32.mrb[11].mxu0  ;;  %v507_v57 = vpop.f32.mrb[11].mxu1 }
 0x116   : > { %v539_v58 = vpack.c.bf16 %v443_v56, %v440_v50  ;;  %v547_v59 = vpack.c.bf16 %v507_v57, %v504_v51 }
 0x117   : > { %556 = vst [vmem:[#allocation2 + $0x28] sm:$0xff] %v540_v54  ;;  %564 = vst [vmem:[#allocation2 + $0x68] sm:$0xff] %v548_v55 }
 0x118   : > { %555 = vst [vmem:[#allocation2 + $0x20] sm:$0xff] %v539_v58  ;;  %563 = vst [vmem:[#allocation2 + $0x60] sm:$0xff] %v547_v59 }
 0x11a   : > { %v1036_v60 = vpop.f32.mrb[12].mxu0  ;;  %v1052_v61 = vpop.f32.mrb[12].mxu1 }
 0x11b   : > { %v456_v62 = vpop.f32.mrb[13].mxu0  ;;  %v520_v63 = vpop.f32.mrb[13].mxu1 }
 0x11c   : > { %v1037_v0 = vpop.f32.mrb[14].mxu0  ;;  %v1053_v1 = vpop.f32.mrb[14].mxu1 }
 0x11d   : > { %v542_v2 = vpack.c.bf16 %v1037_v0, %v1036_v60  ;;  %v550_v3 = vpack.c.bf16 %v1053_v1, %v1052_v61  ;;  %v459_v4 = vpop.f32.mrb[15].mxu0  ;;  %v523_v5 = vpop.f32.mrb[15].mxu1 }
 0x11e   : > { %v541_v6 = vpack.c.bf16 %v459_v4, %v456_v62  ;;  %v549_v7 = vpack.c.bf16 %v523_v5, %v520_v63 }
 0x11f   : > { %558 = vst [vmem:[#allocation2 + $0x38] sm:$0xff] %v542_v2  ;;  %566 = vst [vmem:[#allocation2 + $0x78] sm:$0xff] %v550_v3 }
 0x120   : > { %557 = vst [vmem:[#allocation2 + $0x30] sm:$0xff] %v541_v6  ;;  %565 = vst [vmem:[#allocation2 + $0x70] sm:$0xff] %v549_v7 }
 0x121 PF: > { %v591_v8 = vld [vmem:[#allocation2 + $0x40] sm:$0xff]  ;;  %v592_v10 = vld [vmem:[#allocation2 + $0x48] sm:$0xff]  ;;  %v593_v12 = vld [vmem:[#allocation2 + $0x50] sm:$0xff] }
 0x122   : > { %v583_v9 = vld [vmem:[#allocation2] sm:$0xff]  ;;  %942 = vmatprep.subr.bf16.mxu0 %v591_v8  ;;  %1070 = vmatprep.subr.bf16.mxu1 %v591_v8  ;;  %v584_v11 = vld [vmem:[#allocation2 + $0x8] sm:$0xff]  ;;  %v585_v14 = vld [vmem:[#allocation2 + $0x10] sm:$0xff] }
 0x123   : > { %943 = vmatpush3.bf16.msra.mxu0 %v583_v9  ;;  %1078 = vmatpush3.bf16.msra.mxu1 %v583_v9  ;;  %v1120_v13 = vld [vmem:[%s1181_s18 + $0x4] ss:$8 sps:$4 sm:$0xff]   ;;  %v594_v16 = vld [vmem:[#allocation2 + $0x58] sm:$0xff]  ;;  %v1118_v26 = vld [vmem:[%s1181_s18] ss:$8 sps:$4 sm:$0xff]  }
 0x124   : > { %944 = vmatprep.subr.bf16.mxu0 %v592_v10  ;;  %1071 = vmatprep.subr.bf16.mxu1 %v592_v10  ;;  %v1123_v15 = vld [vmem:[%s1181_s18 + $0x44] ss:$8 sps:$4 sm:$0xff]   ;;  %v586_v17 = vld [vmem:[#allocation2 + $0x18] sm:$0xff]  ;;  %v1121_v27 = vld [vmem:[%s1181_s18 + $0x40] ss:$8 sps:$4 sm:$0xff]  }
 0x125   : > { %711 = vmatprep.mubr.bf16.mxu0 %v1120_v13  ;;  %743 = vmatprep.mubr.bf16.mxu1 %v1123_v15  ;;  %v595_v18 = vld [vmem:[#allocation2 + $0x60] sm:$0xff]  ;;  %v596_v20 = vld [vmem:[#allocation2 + $0x68] sm:$0xff]  ;;  %v1124_v28 = vld [vmem:[%s1181_s18 + $0x14] ss:$8 sps:$4 sm:$0xff]  }
 0x126   : > { %v587_v19 = vld [vmem:[#allocation2 + $0x20] sm:$0xff]  ;;  %v588_v21 = vld [vmem:[#allocation2 + $0x28] sm:$0xff]  ;;  %v598_v24 = vld [vmem:[#allocation2 + $0x78] sm:$0xff] }
 0x127   : > { %945 = vmatpush3.bf16.msra.mxu0 %v584_v11  ;;  %1079 = vmatpush3.bf16.msra.mxu1 %v584_v11  ;;  %v597_v22 = vld [vmem:[#allocation2 + $0x70] sm:$0xff]  ;;  %v590_v25 = vld [vmem:[#allocation2 + $0x38] sm:$0xff]  ;;  %v1130_v32 = vld [vmem:[%s1181_s18 + $0x24] ss:$8 sps:$4 sm:$0xff]  }
 0x128   : > { %946 = vmatprep.subr.bf16.mxu0 %v593_v12  ;;  %1072 = vmatprep.subr.bf16.mxu1 %v593_v12  ;;  %v589_v23 = vld [vmem:[#allocation2 + $0x30] sm:$0xff]  ;;  %v1132_v33 = vld [vmem:[%s1181_s18 + $0x64] ss:$8 sps:$4 sm:$0xff]   ;;  %v1134_v34 = vld [vmem:[%s1181_s18 + $0x20] ss:$8 sps:$4 sm:$0xff]  }
 0x129   : > { %v1126_v29 = vld [vmem:[%s1181_s18 + $0x54] ss:$8 sps:$4 sm:$0xff]   ;;  %v1128_v30 = vld [vmem:[%s1181_s18 + $0x10] ss:$8 sps:$4 sm:$0xff]   ;;  %v1135_v35 = vld [vmem:[%s1181_s18 + $0x60] ss:$8 sps:$4 sm:$0xff]  }
 0x12a   : > { %v1129_v31 = vld [vmem:[%s1181_s18 + $0x50] ss:$8 sps:$4 sm:$0xff]   ;;  %v1136_v36 = vld [vmem:[%s1181_s18 + $0x34] ss:$8 sps:$4 sm:$0xff]  }
 0x12b   : > { %947 = vmatpush3.bf16.msra.mxu0 %v585_v14  ;;  %1080 = vmatpush3.bf16.msra.mxu1 %v585_v14  ;;  %v1138_v37 = vld [vmem:[%s1181_s18 + $0x74] ss:$8 sps:$4 sm:$0xff]   ;;  %v1140_v38 = vld [vmem:[%s1181_s18 + $0x30] ss:$8 sps:$4 sm:$0xff]  }
 0x12c   : > { %948 = vmatprep.subr.bf16.mxu0 %v594_v16  ;;  %1073 = vmatprep.subr.bf16.mxu1 %v594_v16  ;;  %v1141_v39 = vld [vmem:[%s1181_s18 + $0x70] ss:$8 sps:$4 sm:$0xff]  }
 0x12f   : > { %949 = vmatpush3.bf16.msra.mxu0 %v586_v17  ;;  %1081 = vmatpush3.bf16.msra.mxu1 %v586_v17 }
 0x130   : > { %950 = vmatprep.subr.bf16.mxu0 %v595_v18  ;;  %1074 = vmatprep.subr.bf16.mxu1 %v595_v18 }
 0x133   : > { %951 = vmatpush3.bf16.msra.mxu0 %v587_v19  ;;  %1082 = vmatpush3.bf16.msra.mxu1 %v587_v19 }
 0x134   : > { %952 = vmatprep.subr.bf16.mxu0 %v596_v20  ;;  %1075 = vmatprep.subr.bf16.mxu1 %v596_v20 }
 0x137   : > { %953 = vmatpush3.bf16.msra.mxu0 %v588_v21  ;;  %1083 = vmatpush3.bf16.msra.mxu1 %v588_v21 }
 0x138   : > { %954 = vmatprep.subr.bf16.mxu0 %v597_v22  ;;  %1076 = vmatprep.subr.bf16.mxu1 %v597_v22 }
 0x13b   : > { %955 = vmatpush3.bf16.msra.mxu0 %v589_v23  ;;  %1084 = vmatpush3.bf16.msra.mxu1 %v589_v23 }
 0x13c   : > { %956 = vmatprep.subr.bf16.mxu0 %v598_v24  ;;  %1077 = vmatprep.subr.bf16.mxu1 %v598_v24 }
 0x13f   : > { %957 = vmatpush3.bf16.msra.mxu0 %v590_v25  ;;  %1085 = vmatpush3.bf16.msra.mxu1 %v590_v25 }
 0x142   : > { %712 = vmatmul.mubr.bf16.vlgmr.msra.gmra.mrb[0].mxu0 %v1118_v26  ;;  %744 = vmatmul.mubr.bf16.vlgmr.msra.gmra.mrb[0].mxu1 %v1121_v27 }
 0x143   : > { %719 = vmatprep.mubr.bf16.mxu0 %v1124_v28  ;;  %751 = vmatprep.mubr.bf16.mxu1 %v1126_v29 }
 0x14a   : > { %720 = vmatmul.mubr.bf16.gmra.mrb[4].mxu0 %v1128_v30  ;;  %752 = vmatmul.mubr.bf16.gmra.mrb[4].mxu1 %v1129_v31 }
 0x14b   : > { %727 = vmatprep.mubr.bf16.mxu0 %v1130_v32  ;;  %759 = vmatprep.mubr.bf16.mxu1 %v1132_v33 }
 0x152   : > { %728 = vmatmul.mubr.bf16.gmra.mrb[8].mxu0 %v1134_v34  ;;  %760 = vmatmul.mubr.bf16.gmra.mrb[8].mxu1 %v1135_v35 }
 0x153   : > { %735 = vmatprep.mubr.bf16.mxu0 %v1136_v36  ;;  %767 = vmatprep.mubr.bf16.mxu1 %v1138_v37 }
 0x15a   : > { %736 = vmatmul.mubr.bf16.gmra.mrb[12].mxu0 %v1140_v38  ;;  %768 = vmatmul.mubr.bf16.gmra.mrb[12].mxu1 %v1141_v39 }
 0x215   : > { %v958_v40 = vpop.f32.mrb[0].mxu0  ;;  %v982_v41 = vpop.f32.mrb[0].mxu1 }
 0x216   : > { %v959_v42 = vpop.f32.mrb[1].mxu0  ;;  %v983_v43 = vpop.f32.mrb[1].mxu1 }
 0x217   : > { %v960_v44 = vadd.f32 %v959_v42, %v958_v40  ;;  %v984_v45 = vadd.f32 %v983_v43, %v982_v41  ;;  %v961_v46 = vpop.f32.mrb[2].mxu0  ;;  %v985_v47 = vpop.f32.mrb[2].mxu1 }
 0x218   : > { %v962_v48 = vpop.f32.mrb[3].mxu0  ;;  %v986_v49 = vpop.f32.mrb[3].mxu1 }
 0x219   : > { %v776_v50 = vmax.f32 %v960_v44, 0.0  ;;  %v784_v51 = vmax.f32 %v984_v45, 0.0  ;;  %v963_v52 = vadd.f32 %v962_v48, %v961_v46  ;;  %v987_v53 = vadd.f32 %v986_v49, %v985_v47 }
 0x21b   : > { %792 = vst [vmem:[%s1186_s21] sm:$0xff] %v776_v50  ;;  %800 = vst [vmem:[%s1186_s21 + $0x40] sm:$0xff] %v784_v51  ;;  %v777_v54 = vmax.f32 %v963_v52, 0.0  ;;  %v785_v55 = vmax.f32 %v987_v53, 0.0 }
 0x21d   : > { %793 = vst [vmem:[%s1186_s21 + $0x8] sm:$0xff] %v777_v54  ;;  %801 = vst [vmem:[%s1186_s21 + $0x48] sm:$0xff] %v785_v55  ;;  %v964_v56 = vpop.f32.mrb[4].mxu0  ;;  %v988_v57 = vpop.f32.mrb[4].mxu1 }
 0x21e   : > { %v965_v58 = vpop.f32.mrb[5].mxu0  ;;  %v989_v59 = vpop.f32.mrb[5].mxu1 }
 0x21f   : > { %v966_v60 = vadd.f32 %v965_v58, %v964_v56  ;;  %v990_v61 = vadd.f32 %v989_v59, %v988_v57  ;;  %v967_v62 = vpop.f32.mrb[6].mxu0  ;;  %v991_v63 = vpop.f32.mrb[6].mxu1 }
 0x220   : > { %v968_v0 = vpop.f32.mrb[7].mxu0  ;;  %v992_v1 = vpop.f32.mrb[7].mxu1 }
 0x221   : > { %v778_v2 = vmax.f32 %v966_v60, 0.0  ;;  %v786_v3 = vmax.f32 %v990_v61, 0.0  ;;  %v969_v4 = vadd.f32 %v968_v0, %v967_v62  ;;  %v993_v5 = vadd.f32 %v992_v1, %v991_v63 }
 0x223   : > { %794 = vst [vmem:[%s1186_s21 + $0x10] sm:$0xff] %v778_v2  ;;  %802 = vst [vmem:[%s1186_s21 + $0x50] sm:$0xff] %v786_v3  ;;  %v779_v6 = vmax.f32 %v969_v4, 0.0  ;;  %v787_v7 = vmax.f32 %v993_v5, 0.0 }
 0x225   : > { %795 = vst [vmem:[%s1186_s21 + $0x18] sm:$0xff] %v779_v6  ;;  %803 = vst [vmem:[%s1186_s21 + $0x58] sm:$0xff] %v787_v7  ;;  %v970_v8 = vpop.f32.mrb[8].mxu0  ;;  %v994_v9 = vpop.f32.mrb[8].mxu1 }
 0x226   : > { %v971_v10 = vpop.f32.mrb[9].mxu0  ;;  %v995_v11 = vpop.f32.mrb[9].mxu1 }
 0x227   : > { %v972_v12 = vadd.f32 %v971_v10, %v970_v8  ;;  %v996_v13 = vadd.f32 %v995_v11, %v994_v9  ;;  %v973_v14 = vpop.f32.mrb[10].mxu0  ;;  %v997_v15 = vpop.f32.mrb[10].mxu1 }
 0x228   : > { %v974_v16 = vpop.f32.mrb[11].mxu0  ;;  %v998_v17 = vpop.f32.mrb[11].mxu1 }
 0x229   : > { %v780_v18 = vmax.f32 %v972_v12, 0.0  ;;  %v788_v19 = vmax.f32 %v996_v13, 0.0  ;;  %v975_v20 = vadd.f32 %v974_v16, %v973_v14  ;;  %v999_v21 = vadd.f32 %v998_v17, %v997_v15 }
 0x22b   : > { %796 = vst [vmem:[%s1186_s21 + $0x20] sm:$0xff] %v780_v18  ;;  %804 = vst [vmem:[%s1186_s21 + $0x60] sm:$0xff] %v788_v19  ;;  %v781_v22 = vmax.f32 %v975_v20, 0.0  ;;  %v789_v23 = vmax.f32 %v999_v21, 0.0 }
 0x22d   : > { %797 = vst [vmem:[%s1186_s21 + $0x28] sm:$0xff] %v781_v22  ;;  %805 = vst [vmem:[%s1186_s21 + $0x68] sm:$0xff] %v789_v23  ;;  %v976_v24 = vpop.f32.mrb[12].mxu0  ;;  %v1000_v25 = vpop.f32.mrb[12].mxu1 }
 0x22e   : > { %v977_v26 = vpop.f32.mrb[13].mxu0  ;;  %v1001_v27 = vpop.f32.mrb[13].mxu1 }
 0x22f   : > { %v978_v28 = vadd.f32 %v977_v26, %v976_v24  ;;  %v1002_v29 = vadd.f32 %v1001_v27, %v1000_v25  ;;  %v979_v30 = vpop.f32.mrb[14].mxu0  ;;  %v1003_v31 = vpop.f32.mrb[14].mxu1 }
 0x230   : > { %v980_v32 = vpop.f32.mrb[15].mxu0  ;;  %v1004_v33 = vpop.f32.mrb[15].mxu1 }
 0x231   : > { %v782_v34 = vmax.f32 %v978_v28, 0.0  ;;  %v790_v35 = vmax.f32 %v1002_v29, 0.0  ;;  %v981_v36 = vadd.f32 %v980_v32, %v979_v30  ;;  %v1005_v37 = vadd.f32 %v1004_v33, %v1003_v31 }
 0x233   : > { %798 = vst [vmem:[%s1186_s21 + $0x30] sm:$0xff] %v782_v34  ;;  %806 = vst [vmem:[%s1186_s21 + $0x70] sm:$0xff] %v790_v35  ;;  %v783_v38 = vmax.f32 %v981_v36, 0.0  ;;  %v791_v39 = vmax.f32 %v1005_v37, 0.0 }
 0x235   : > { %799 = vst [vmem:[%s1186_s21 + $0x38] sm:$0xff] %v783_v38  ;;  %807 = vst [vmem:[%s1186_s21 + $0x78] sm:$0xff] %v791_v39 }
 0x236 PF: > { %s13_s12 = sadd.s32 1, %s1148_s12  }
 0x237   : > { %p10_p5 = scmp.ge.s32.totalorder %s13_s12, 4  }
 0x239   :  { %12 = sbr.rel (!%p10_p5) target bundleno = 1 (0x1), region = 66 }

// kernel: gcn_two_layer.2
= control target key start
LH: loop header
LB: loop body
LE: loop exit
PB: predicated region body
PF: predicated region fallthrough
CT: control target
= control target key end

     0   :  { %s1313_s12 = smov 0   ;;  %s1430_s0 = inlined_call_operand.vmem [shape: bf16[256,128], index: 0, kind: input, shape index: {}]   ;;  %s1431_s1 = inlined_call_operand.vmem [shape: bf16[128,128], index: 1, kind: input, shape index: {}]   ;;  %s1432_s2 = inlined_call_operand.vmem [shape: bf16[256,256], index: 2, kind: input, shape index: {}]   ;;  %s1433_s3 = inlined_call_operand.vmem [shape: bf16[256,128], index: 3, kind: output, shape index: {}]  }
   0x1 LB: > { %s928_s13 = sadd.s32 4294967295, %s1291_s12   ;;  %p932_p0 = scmp.ge.s32.totalorder %s1291_s12, 1  ;;  %s1291_s12 = sphi %s1313_s12, %s13_s12  }
   0x2   : > { %p139_p1 = scmp.lt.s32.totalorder %s1291_s12, 3 }
   0x4   : > { %p140_p2 = pnand %p932_p0, %p139_p1 }
   0x5   : > { %s933_s14 = sshll.u32 (!%p140_p2), %s928_s13, 4  ;;  %p938_p4 = scmp.ne.s32.totalorder (!%p140_p2), %s928_s13, 0 }
   0x6   : > { %143 = sbr.rel (%p140_p2) target bundleno = 568 (0x238), region = 32  ;;  %p165_p3 = scmp.lt.s32.totalorder (!%p140_p2), %s933_s14, 31 }
   0xd   : > { %s1435_s14 = smov (!%p165_p3, %s933_s14), 31  ;;  %181 = sbr.rel (%p938_p4) target bundleno = 289 (0x121), region = 36 }
   0xe   : > { %s997_s15 = sshll.u32 %s1435_s14, 3  ;;  %s937_s16 = sshll.u32 %s1435_s14, 2  ;;  %v1237_v0 = vld [vmem:[%s1431_s1] sm:$0xff] (!%p938_p4)   ;;  %v1238_v1 = vld [vmem:[%s1431_s1 + $0x8] sm:$0xff] (!%p938_p4)   ;;  %v1239_v2 = vld [vmem:[%s1431_s1 + $0x10] sm:$0xff] (!%p938_p4)  }
   0xf   : > { %s1324_s19 = scalar_lea.vmem %s1432_s2, %s997_s15  ;;  %s1329_s22 = scalar_lea.vmem %s1433_s3, %s937_s16  ;;  %1149 = vmatprep.subr.bf16.mxu0 (!%p938_p4), %v1237_v0  ;;  %1197 = vmatprep.subr.bf16.mxu1 (!%p938_p4), %v1237_v0  ;;  %v1240_v3 = vld [vmem:[%s1431_s1 + $0x18] sm:$0xff] (!%p938_p4)   ;;  %v1245_v4 = vld [vmem:[%s1430_s0] sm:$0xff] (!%p938_p4)   ;;  %v1242_v7 = vld [vmem:[%s1431_s1 + $0x28] sm:$0xff] (!%p938_p4)  }
  0x10   : > { %1150 = vmatpush3.bf16.msra.mxu0 (!%p938_p4), %v1237_v0  ;;  %1205 = vmatpush3.bf16.msra.mxu1 (!%p938_p4), %v1237_v0  ;;  %v1246_v5 = vld [vmem:[%s1430_s0 + $0x40] sm:$0xff] (!%p938_p4)   ;;  %v1243_v8 = vld [vmem:[%s1431_s1 + $0x30] sm:$0xff] (!%p938_p4)   ;;  %v1244_v9 = vld [vmem:[%s1431_s1 + $0x38] sm:$0xff] (!%p938_p4)  }
  0x11   : > { %1151 = vmatprep.subr.bf16.mxu0 (!%p938_p4), %v1238_v1  ;;  %1198 = vmatprep.subr.bf16.mxu1 (!%p938_p4), %v1238_v1  ;;  %v1241_v6 = vld [vmem:[%s1431_s1 + $0x20] sm:$0xff] (!%p938_p4)   ;;  %v1247_v10 = vld [vmem:[%s1430_s0 + $0x8] sm:$0xff] (!%p938_p4)   ;;  %v1249_v12 = vld [vmem:[%s1430_s0 + $0x10] sm:$0xff] (!%p938_p4)  }
  0x12   : > { %1165 = vmatprep.mubr.bf16.mxu0 (!%p938_p4), %v1245_v4  ;;  %1181 = vmatprep.mubr.bf16.mxu1 (!%p938_p4), %v1246_v5  ;;  %v1248_v11 = vld [vmem:[%s1430_s0 + $0x48] sm:$0xff] (!%p938_p4)   ;;  %v1250_v13 = vld [vmem:[%s1430_s0 + $0x50] sm:$0xff] (!%p938_p4)   ;;  %v1251_v14 = vld [vmem:[%s1430_s0 + $0x18] sm:$0xff] (!%p938_p4)  }
  0x13   : > { %v1252_v15 = vld [vmem:[%s1430_s0 + $0x58] sm:$0xff] (!%p938_p4)   ;;  %v1253_v16 = vld [vmem:[%s1430_s0 + $0x20] sm:$0xff] (!%p938_p4)   ;;  %v1255_v18 = vld [vmem:[%s1430_s0 + $0x28] sm:$0xff] (!%p938_p4)  }
  0x14   : > { %1152 = vmatpush3.bf16.msra.mxu0 %v1238_v1  ;;  %1206 = vmatpush3.bf16.msra.mxu1 %v1238_v1  ;;  %v1254_v17 = vld [vmem:[%s1430_s0 + $0x60] sm:$0xff]   ;;  %v1256_v19 = vld [vmem:[%s1430_s0 + $0x68] sm:$0xff]   ;;  %v1257_v20 = vld [vmem:[%s1430_s0 + $0x30] sm:$0xff]  }
  0x15   : > { %1153 = vmatprep.subr.bf16.mxu0 %v1239_v2  ;;  %1199 = vmatprep.subr.bf16.mxu1 %v1239_v2  ;;  %v1258_v21 = vld [vmem:[%s1430_s0 + $0x70] sm:$0xff]   ;;  %v1259_v22 = vld [vmem:[%s1430_s0 + $0x38] sm:$0xff]  }
  0x16   : > { %v1260_v23 = vld [vmem:[%s1430_s0 + $0x78] sm:$0xff]  }
  0x18   : > { %1154 = vmatpush3.bf16.msra.mxu0 %v1239_v2  ;;  %1207 = vmatpush3.bf16.msra.mxu1 %v1239_v2 }
  0x19   : > { %1155 = vmatprep.subr.bf16.mxu0 %v1240_v3  ;;  %1200 = vmatprep.subr.bf16.mxu1 %v1240_v3 }
  0x1c   : > { %1156 = vmatpush3.bf16.msra.mxu0 %v1240_v3  ;;  %1208 = vmatpush3.bf16.msra.mxu1 %v1240_v3 }
  0x1d   : > { %1157 = vmatprep.subr.bf16.mxu0 %v1241_v6  ;;  %1201 = vmatprep.subr.bf16.mxu1 %v1241_v6 }
  0x20   : > { %1158 = vmatpush3.bf16.msra.mxu0 %v1241_v6  ;;  %1209 = vmatpush3.bf16.msra.mxu1 %v1241_v6 }
  0x21   : > { %1159 = vmatprep.subr.bf16.mxu0 %v1242_v7  ;;  %1202 = vmatprep.subr.bf16.mxu1 %v1242_v7 }
  0x24   : > { %1160 = vmatpush3.bf16.msra.mxu0 %v1242_v7  ;;  %1210 = vmatpush3.bf16.msra.mxu1 %v1242_v7 }
  0x25   : > { %1161 = vmatprep.subr.bf16.mxu0 %v1243_v8  ;;  %1203 = vmatprep.subr.bf16.mxu1 %v1243_v8 }
  0x28   : > { %1162 = vmatpush3.bf16.msra.mxu0 %v1243_v8  ;;  %1211 = vmatpush3.bf16.msra.mxu1 %v1243_v8 }
  0x29   : > { %1163 = vmatprep.subr.bf16.mxu0 %v1244_v9  ;;  %1204 = vmatprep.subr.bf16.mxu1 %v1244_v9 }
  0x2c   : > { %1164 = vmatpush3.bf16.msra.mxu0 %v1244_v9  ;;  %1212 = vmatpush3.bf16.msra.mxu1 %v1244_v9 }
  0x2f   : > { %1166 = vmatmul.mubr.bf16.vlgmr.msra.gmra.mrb[0].mxu0 %v1247_v10  ;;  %1182 = vmatmul.mubr.bf16.vlgmr.msra.gmra.mrb[0].mxu1 %v1248_v11 }
  0x30   : > { %1169 = vmatprep.mubr.bf16.mxu0 %v1249_v12  ;;  %1185 = vmatprep.mubr.bf16.mxu1 %v1250_v13 }
  0x37   : > { %1170 = vmatmul.mubr.bf16.gmra.mrb[4].mxu0 %v1251_v14  ;;  %1186 = vmatmul.mubr.bf16.gmra.mrb[4].mxu1 %v1252_v15 }
  0x38   : > { %1173 = vmatprep.mubr.bf16.mxu0 %v1253_v16  ;;  %1189 = vmatprep.mubr.bf16.mxu1 %v1254_v17 }
  0x3f   : > { %1174 = vmatmul.mubr.bf16.gmra.mrb[8].mxu0 %v1255_v18  ;;  %1190 = vmatmul.mubr.bf16.gmra.mrb[8].mxu1 %v1256_v19 }
  0x40   : > { %1177 = vmatprep.mubr.bf16.mxu0 %v1257_v20  ;;  %1193 = vmatprep.mubr.bf16.mxu1 %v1258_v21 }
  0x47   : > { %1178 = vmatmul.mubr.bf16.gmra.mrb[12].mxu0 %v1259_v22  ;;  %1194 = vmatmul.mubr.bf16.gmra.mrb[12].mxu1 %v1260_v23 }
 0x102   : > { %v1167_v24 = vpop.f32.mrb[0].mxu0  ;;  %v1183_v25 = vpop.f32.mrb[0].mxu1 }
 0x103   : > { %v408_v26 = vpop.f32.mrb[1].mxu0  ;;  %v472_v27 = vpop.f32.mrb[1].mxu1 }
 0x104   : > { %v1168_v28 = vpop.f32.mrb[2].mxu0  ;;  %v1184_v29 = vpop.f32.mrb[2].mxu1 }
 0x105   : > { %v536_v30 = vpack.c.bf16 %v1168_v28, %v1167_v24  ;;  %v544_v31 = vpack.c.bf16 %v1184_v29, %v1183_v25  ;;  %v411_v32 = vpop.f32.mrb[3].mxu0  ;;  %v475_v33 = vpop.f32.mrb[3].mxu1 }
 0x106   : > { %v535_v34 = vpack.c.bf16 %v411_v32, %v408_v26  ;;  %v543_v35 = vpack.c.bf16 %v475_v33, %v472_v27 }
 0x107   : > { %552 = vst [vmem:[#allocation2 + $0x8] sm:$0xff] %v536_v30  ;;  %560 = vst [vmem:[#allocation2 + $0x48] sm:$0xff] %v544_v31 }
 0x108   : > { %551 = vst [vmem:[#allocation2] sm:$0xff] %v535_v34  ;;  %559 = vst [vmem:[#allocation2 + $0x40] sm:$0xff] %v543_v35 }
 0x10a   : > { %v1171_v36 = vpop.f32.mrb[4].mxu0  ;;  %v1187_v37 = vpop.f32.mrb[4].mxu1 }
 0x10b   : > { %v424_v38 = vpop.f32.mrb[5].mxu0  ;;  %v488_v39 = vpop.f32.mrb[5].mxu1 }
 0x10c   : > { %v1172_v40 = vpop.f32.mrb[6].mxu0  ;;  %v1188_v41 = vpop.f32.mrb[6].mxu1 }
 0x10d   : > { %v538_v42 = vpack.c.bf16 %v1172_v40, %v1171_v36  ;;  %v546_v43 = vpack.c.bf16 %v1188_v41, %v1187_v37  ;;  %v427_v44 = vpop.f32.mrb[7].mxu0  ;;  %v491_v45 = vpop.f32.mrb[7].mxu1 }
 0x10e   : > { %v537_v46 = vpack.c.bf16 %v427_v44, %v424_v38  ;;  %v545_v47 = vpack.c.bf16 %v491_v45, %v488_v39 }
 0x10f   : > { %554 = vst [vmem:[#allocation2 + $0x18] sm:$0xff] %v538_v42  ;;  %562 = vst [vmem:[#allocation2 + $0x58] sm:$0xff] %v546_v43 }
 0x110   : > { %553 = vst [vmem:[#allocation2 + $0x10] sm:$0xff] %v537_v46  ;;  %561 = vst [vmem:[#allocation2 + $0x50] sm:$0xff] %v545_v47 }
 0x112   : > { %v1175_v48 = vpop.f32.mrb[8].mxu0  ;;  %v1191_v49 = vpop.f32.mrb[8].mxu1 }
 0x113   : > { %v440_v50 = vpop.f32.mrb[9].mxu0  ;;  %v504_v51 = vpop.f32.mrb[9].mxu1 }
 0x114   : > { %v1176_v52 = vpop.f32.mrb[10].mxu0  ;;  %v1192_v53 = vpop.f32.mrb[10].mxu1 }
 0x115   : > { %v540_v54 = vpack.c.bf16 %v1176_v52, %v1175_v48  ;;  %v548_v55 = vpack.c.bf16 %v1192_v53, %v1191_v49  ;;  %v443_v56 = vpop.f32.mrb[11].mxu0  ;;  %v507_v57 = vpop.f32.mrb[11].mxu1 }
 0x116   : > { %v539_v58 = vpack.c.bf16 %v443_v56, %v440_v50  ;;  %v547_v59 = vpack.c.bf16 %v507_v57, %v504_v51 }
 0x117   : > { %556 = vst [vmem:[#allocation2 + $0x28] sm:$0xff] %v540_v54  ;;  %564 = vst [vmem:[#allocation2 + $0x68] sm:$0xff] %v548_v55 }
 0x118   : > { %555 = vst [vmem:[#allocation2 + $0x20] sm:$0xff] %v539_v58  ;;  %563 = vst [vmem:[#allocation2 + $0x60] sm:$0xff] %v547_v59 }
 0x11a   : > { %v1179_v60 = vpop.f32.mrb[12].mxu0  ;;  %v1195_v61 = vpop.f32.mrb[12].mxu1 }
 0x11b   : > { %v456_v62 = vpop.f32.mrb[13].mxu0  ;;  %v520_v63 = vpop.f32.mrb[13].mxu1 }
 0x11c   : > { %v1180_v0 = vpop.f32.mrb[14].mxu0  ;;  %v1196_v1 = vpop.f32.mrb[14].mxu1 }
 0x11d   : > { %v542_v2 = vpack.c.bf16 %v1180_v0, %v1179_v60  ;;  %v550_v3 = vpack.c.bf16 %v1196_v1, %v1195_v61  ;;  %v459_v4 = vpop.f32.mrb[15].mxu0  ;;  %v523_v5 = vpop.f32.mrb[15].mxu1 }
 0x11e   : > { %v541_v6 = vpack.c.bf16 %v459_v4, %v456_v62  ;;  %v549_v7 = vpack.c.bf16 %v523_v5, %v520_v63 }
 0x11f   : > { %558 = vst [vmem:[#allocation2 + $0x38] sm:$0xff] %v542_v2  ;;  %566 = vst [vmem:[#allocation2 + $0x78] sm:$0xff] %v550_v3 }
 0x120   : > { %557 = vst [vmem:[#allocation2 + $0x30] sm:$0xff] %v541_v6  ;;  %565 = vst [vmem:[#allocation2 + $0x70] sm:$0xff] %v549_v7 }
 0x121 PF: > { %v591_v8 = vld [vmem:[#allocation2 + $0x40] sm:$0xff]  ;;  %v592_v10 = vld [vmem:[#allocation2 + $0x48] sm:$0xff]  ;;  %v593_v12 = vld [vmem:[#allocation2 + $0x50] sm:$0xff] }
 0x122   : > { %v583_v9 = vld [vmem:[#allocation2] sm:$0xff]  ;;  %1085 = vmatprep.subr.bf16.mxu0 %v591_v8  ;;  %1213 = vmatprep.subr.bf16.mxu1 %v591_v8  ;;  %v584_v11 = vld [vmem:[#allocation2 + $0x8] sm:$0xff]  ;;  %v585_v14 = vld [vmem:[#allocation2 + $0x10] sm:$0xff] }
 0x123   : > { %1086 = vmatpush3.bf16.msra.mxu0 %v583_v9  ;;  %1221 = vmatpush3.bf16.msra.mxu1 %v583_v9  ;;  %v1263_v13 = vld [vmem:[%s1324_s19 + $0x4] ss:$8 sps:$4 sm:$0xff]   ;;  %v594_v16 = vld [vmem:[#allocation2 + $0x58] sm:$0xff]  ;;  %v1261_v26 = vld [vmem:[%s1324_s19] ss:$8 sps:$4 sm:$0xff]  }
 0x124   : > { %1087 = vmatprep.subr.bf16.mxu0 %v592_v10  ;;  %1214 = vmatprep.subr.bf16.mxu1 %v592_v10  ;;  %v1266_v15 = vld [vmem:[%s1324_s19 + $0x44] ss:$8 sps:$4 sm:$0xff]   ;;  %v586_v17 = vld [vmem:[#allocation2 + $0x18] sm:$0xff]  ;;  %v1264_v27 = vld [vmem:[%s1324_s19 + $0x40] ss:$8 sps:$4 sm:$0xff]  }
 0x125   : > { %711 = vmatprep.mubr.bf16.mxu0 %v1263_v13  ;;  %743 = vmatprep.mubr.bf16.mxu1 %v1266_v15  ;;  %v595_v18 = vld [vmem:[#allocation2 + $0x60] sm:$0xff]  ;;  %v596_v20 = vld [vmem:[#allocation2 + $0x68] sm:$0xff]  ;;  %v1267_v28 = vld [vmem:[%s1324_s19 + $0x14] ss:$8 sps:$4 sm:$0xff]  }
 0x126   : > { %v587_v19 = vld [vmem:[#allocation2 + $0x20] sm:$0xff]  ;;  %v588_v21 = vld [vmem:[#allocation2 + $0x28] sm:$0xff]  ;;  %v598_v24 = vld [vmem:[#allocation2 + $0x78] sm:$0xff] }
 0x127   : > { %1088 = vmatpush3.bf16.msra.mxu0 %v584_v11  ;;  %1222 = vmatpush3.bf16.msra.mxu1 %v584_v11  ;;  %v597_v22 = vld [vmem:[#allocation2 + $0x70] sm:$0xff]  ;;  %v590_v25 = vld [vmem:[#allocation2 + $0x38] sm:$0xff]  ;;  %v1273_v32 = vld [vmem:[%s1324_s19 + $0x24] ss:$8 sps:$4 sm:$0xff]  }
 0x128   : > { %1089 = vmatprep.subr.bf16.mxu0 %v593_v12  ;;  %1215 = vmatprep.subr.bf16.mxu1 %v593_v12  ;;  %v589_v23 = vld [vmem:[#allocation2 + $0x30] sm:$0xff]  ;;  %v1275_v33 = vld [vmem:[%s1324_s19 + $0x64] ss:$8 sps:$4 sm:$0xff]   ;;  %v1277_v34 = vld [vmem:[%s1324_s19 + $0x20] ss:$8 sps:$4 sm:$0xff]  }
 0x129   : > { %v1269_v29 = vld [vmem:[%s1324_s19 + $0x54] ss:$8 sps:$4 sm:$0xff]   ;;  %v1271_v30 = vld [vmem:[%s1324_s19 + $0x10] ss:$8 sps:$4 sm:$0xff]   ;;  %v1278_v35 = vld [vmem:[%s1324_s19 + $0x60] ss:$8 sps:$4 sm:$0xff]  }
 0x12a   : > { %v1272_v31 = vld [vmem:[%s1324_s19 + $0x50] ss:$8 sps:$4 sm:$0xff]   ;;  %v1279_v36 = vld [vmem:[%s1324_s19 + $0x34] ss:$8 sps:$4 sm:$0xff]  }
 0x12b   : > { %1090 = vmatpush3.bf16.msra.mxu0 %v585_v14  ;;  %1223 = vmatpush3.bf16.msra.mxu1 %v585_v14  ;;  %v1281_v37 = vld [vmem:[%s1324_s19 + $0x74] ss:$8 sps:$4 sm:$0xff]   ;;  %v1283_v38 = vld [vmem:[%s1324_s19 + $0x30] ss:$8 sps:$4 sm:$0xff]  }
 0x12c   : > { %1091 = vmatprep.subr.bf16.mxu0 %v594_v16  ;;  %1216 = vmatprep.subr.bf16.mxu1 %v594_v16  ;;  %v1284_v39 = vld [vmem:[%s1324_s19 + $0x70] ss:$8 sps:$4 sm:$0xff]  }
 0x12f   : > { %1092 = vmatpush3.bf16.msra.mxu0 %v586_v17  ;;  %1224 = vmatpush3.bf16.msra.mxu1 %v586_v17 }
 0x130   : > { %1093 = vmatprep.subr.bf16.mxu0 %v595_v18  ;;  %1217 = vmatprep.subr.bf16.mxu1 %v595_v18 }
 0x133   : > { %1094 = vmatpush3.bf16.msra.mxu0 %v587_v19  ;;  %1225 = vmatpush3.bf16.msra.mxu1 %v587_v19 }
 0x134   : > { %1095 = vmatprep.subr.bf16.mxu0 %v596_v20  ;;  %1218 = vmatprep.subr.bf16.mxu1 %v596_v20 }
 0x137   : > { %1096 = vmatpush3.bf16.msra.mxu0 %v588_v21  ;;  %1226 = vmatpush3.bf16.msra.mxu1 %v588_v21 }
 0x138   : > { %1097 = vmatprep.subr.bf16.mxu0 %v597_v22  ;;  %1219 = vmatprep.subr.bf16.mxu1 %v597_v22 }
 0x13b   : > { %1098 = vmatpush3.bf16.msra.mxu0 %v589_v23  ;;  %1227 = vmatpush3.bf16.msra.mxu1 %v589_v23 }
 0x13c   : > { %1099 = vmatprep.subr.bf16.mxu0 %v598_v24  ;;  %1220 = vmatprep.subr.bf16.mxu1 %v598_v24 }
 0x13f   : > { %1100 = vmatpush3.bf16.msra.mxu0 %v590_v25  ;;  %1228 = vmatpush3.bf16.msra.mxu1 %v590_v25 }
 0x142   : > { %712 = vmatmul.mubr.bf16.vlgmr.msra.gmra.mrb[0].mxu0 %v1261_v26  ;;  %744 = vmatmul.mubr.bf16.vlgmr.msra.gmra.mrb[0].mxu1 %v1264_v27 }
 0x143   : > { %719 = vmatprep.mubr.bf16.mxu0 %v1267_v28  ;;  %751 = vmatprep.mubr.bf16.mxu1 %v1269_v29 }
 0x14a   : > { %720 = vmatmul.mubr.bf16.gmra.mrb[4].mxu0 %v1271_v30  ;;  %752 = vmatmul.mubr.bf16.gmra.mrb[4].mxu1 %v1272_v31 }
 0x14b   : > { %727 = vmatprep.mubr.bf16.mxu0 %v1273_v32  ;;  %759 = vmatprep.mubr.bf16.mxu1 %v1275_v33 }
 0x152   : > { %728 = vmatmul.mubr.bf16.gmra.mrb[8].mxu0 %v1277_v34  ;;  %760 = vmatmul.mubr.bf16.gmra.mrb[8].mxu1 %v1278_v35 }
 0x153   : > { %735 = vmatprep.mubr.bf16.mxu0 %v1279_v36  ;;  %767 = vmatprep.mubr.bf16.mxu1 %v1281_v37 }
 0x15a   : > { %736 = vmatmul.mubr.bf16.gmra.mrb[12].mxu0 %v1283_v38  ;;  %768 = vmatmul.mubr.bf16.gmra.mrb[12].mxu1 %v1284_v39 }
 0x215   : > { %v1101_v40 = vpop.f32.mrb[0].mxu0  ;;  %v1125_v41 = vpop.f32.mrb[0].mxu1 }
 0x216   : > { %v1102_v42 = vpop.f32.mrb[1].mxu0  ;;  %v1126_v43 = vpop.f32.mrb[1].mxu1 }
 0x217   : > { %v1103_v44 = vadd.f32 %v1102_v42, %v1101_v40  ;;  %v1127_v45 = vadd.f32 %v1126_v43, %v1125_v41  ;;  %v1104_v46 = vpop.f32.mrb[2].mxu0  ;;  %v1128_v47 = vpop.f32.mrb[2].mxu1 }
 0x218   : > { %v1105_v48 = vpop.f32.mrb[3].mxu0  ;;  %v1129_v49 = vpop.f32.mrb[3].mxu1 }
 0x219   : > { %v1106_v50 = vadd.f32 %v1105_v48, %v1104_v46  ;;  %v1130_v51 = vadd.f32 %v1129_v49, %v1128_v47  ;;  %v776_v52 = vmax.f32 %v1103_v44, 0.0  ;;  %v784_v53 = vmax.f32 %v1127_v45, 0.0 }
 0x21b   : > { %v777_v54 = vmax.f32 %v1106_v50, 0.0  ;;  %v785_v55 = vmax.f32 %v1130_v51, 0.0 }
 0x21d   : > { %v1017_v56 = vpack.c.bf16 %v777_v54, %v776_v52  ;;  %v1037_v57 = vpack.c.bf16 %v785_v55, %v784_v53  ;;  %v1107_v58 = vpop.f32.mrb[4].mxu0  ;;  %v1131_v59 = vpop.f32.mrb[4].mxu1 }
 0x21e   : > { %v1108_v60 = vpop.f32.mrb[5].mxu0  ;;  %v1132_v61 = vpop.f32.mrb[5].mxu1 }
 0x21f   : > { %1018 = vst [vmem:[%s1329_s22] sm:$0xff] %v1017_v56   ;;  %1057 = vst [vmem:[%s1329_s22 + $0x20] sm:$0xff] %v1037_v57   ;;  %v1109_v62 = vadd.f32 %v1108_v60, %v1107_v58  ;;  %v1133_v63 = vadd.f32 %v1132_v61, %v1131_v59  ;;  %v1110_v0 = vpop.f32.mrb[6].mxu0  ;;  %v1134_v1 = vpop.f32.mrb[6].mxu1 }
 0x220   : > { %v1111_v2 = vpop.f32.mrb[7].mxu0  ;;  %v1135_v3 = vpop.f32.mrb[7].mxu1 }
 0x221   : > { %v1112_v4 = vadd.f32 %v1111_v2, %v1110_v0  ;;  %v1136_v5 = vadd.f32 %v1135_v3, %v1134_v1  ;;  %v778_v6 = vmax.f32 %v1109_v62, 0.0  ;;  %v786_v7 = vmax.f32 %v1133_v63, 0.0 }
 0x223   : > { %v779_v8 = vmax.f32 %v1112_v4, 0.0  ;;  %v787_v9 = vmax.f32 %v1136_v5, 0.0 }
 0x225   : > { %v1022_v10 = vpack.c.bf16 %v779_v8, %v778_v6  ;;  %v1042_v11 = vpack.c.bf16 %v787_v9, %v786_v7  ;;  %v1113_v12 = vpop.f32.mrb[8].mxu0  ;;  %v1137_v13 = vpop.f32.mrb[8].mxu1 }
 0x226   : > { %v1114_v14 = vpop.f32.mrb[9].mxu0  ;;  %v1138_v15 = vpop.f32.mrb[9].mxu1 }
 0x227   : > { %1054 = vst [vmem:[%s1329_s22 + $0x8] sm:$0xff] %v1022_v10   ;;  %1058 = vst [vmem:[%s1329_s22 + $0x28] sm:$0xff] %v1042_v11   ;;  %v1115_v16 = vadd.f32 %v1114_v14, %v1113_v12  ;;  %v1139_v17 = vadd.f32 %v1138_v15, %v1137_v13  ;;  %v1116_v18 = vpop.f32.mrb[10].mxu0  ;;  %v1140_v19 = vpop.f32.mrb[10].mxu1 }
 0x228   : > { %v1117_v20 = vpop.f32.mrb[11].mxu0  ;;  %v1141_v21 = vpop.f32.mrb[11].mxu1 }
 0x229   : > { %v1118_v22 = vadd.f32 %v1117_v20, %v1116_v18  ;;  %v1142_v23 = vadd.f32 %v1141_v21, %v1140_v19  ;;  %v780_v24 = vmax.f32 %v1115_v16, 0.0  ;;  %v788_v25 = vmax.f32 %v1139_v17, 0.0 }
 0x22b   : > { %v781_v26 = vmax.f32 %v1118_v22, 0.0  ;;  %v789_v27 = vmax.f32 %v1142_v23, 0.0 }
 0x22d   : > { %v1027_v28 = vpack.c.bf16 %v781_v26, %v780_v24  ;;  %v1047_v29 = vpack.c.bf16 %v789_v27, %v788_v25  ;;  %v1119_v30 = vpop.f32.mrb[12].mxu0  ;;  %v1143_v31 = vpop.f32.mrb[12].mxu1 }
 0x22e   : > { %v1120_v32 = vpop.f32.mrb[13].mxu0  ;;  %v1144_v33 = vpop.f32.mrb[13].mxu1 }
 0x22f   : > { %1055 = vst [vmem:[%s1329_s22 + $0x10] sm:$0xff] %v1027_v28   ;;  %1059 = vst [vmem:[%s1329_s22 + $0x30] sm:$0xff] %v1047_v29   ;;  %v1121_v34 = vadd.f32 %v1120_v32, %v1119_v30  ;;  %v1145_v35 = vadd.f32 %v1144_v33, %v1143_v31  ;;  %v1122_v36 = vpop.f32.mrb[14].mxu0  ;;  %v1146_v37 = vpop.f32.mrb[14].mxu1 }
 0x230   : > { %v1123_v38 = vpop.f32.mrb[15].mxu0  ;;  %v1147_v39 = vpop.f32.mrb[15].mxu1 }
 0x231   : > { %v1124_v40 = vadd.f32 %v1123_v38, %v1122_v36  ;;  %v1148_v41 = vadd.f32 %v1147_v39, %v1146_v37  ;;  %v782_v42 = vmax.f32 %v1121_v34, 0.0  ;;  %v790_v43 = vmax.f32 %v1145_v35, 0.0 }
 0x233   : > { %v783_v44 = vmax.f32 %v1124_v40, 0.0  ;;  %v791_v45 = vmax.f32 %v1148_v41, 0.0 }
 0x235   : > { %v1032_v46 = vpack.c.bf16 %v783_v44, %v782_v42  ;;  %v1052_v47 = vpack.c.bf16 %v791_v45, %v790_v43 }
 0x237   : > { %1056 = vst [vmem:[%s1329_s22 + $0x18] sm:$0xff] %v1032_v46   ;;  %1060 = vst [vmem:[%s1329_s22 + $0x38] sm:$0xff] %v1052_v47  }
 0x238 PF: > { %s13_s12 = sadd.s32 1, %s1291_s12  }
 0x239   : > { %p10_p5 = scmp.ge.s32.totalorder %s13_s12, 4  }
 0x23b   :  { %12 = sbr.rel (!%p10_p5) target bundleno = 1 (0x1), region = 66 }

</bundles_post_ra>
